<compile_context>
chip_gen: v5e
topology: v5e:2x2
jax: 0.10.0
libtpu: 0.0.40
codegen_flags: <defaults>
</compile_context>

<pallas_src>
import functools

import jax
import jax.numpy as jnp
from jax.experimental import pallas as pl
from jax.experimental.pallas import tpu as pltpu


TILE_B_MAX = 4096   # cap so double-buffered tiles fit v5e's 16 MiB scoped VMEM
SUB_ROWS = 512      # in-kernel sub-block: keeps h = (SUB_ROWS, 6) register-resident


def _round_up(n, m):
    return ((n + m - 1) // m) * m


def mlp_kernel(x_ref, w1_ref, b1_ref, w2_ref, b2_ref, o_ref, *, sub, nsub):
    """Fused 2-layer MLP on one (tile_b, cin) batch tile.

    Processes the tile in `nsub` static sub-blocks of `sub` rows so the
    (sub, 6) intermediate stays live only between its two MXU dots.
    """
    w1 = w1_ref[...]
    b1 = b1_ref[...]
    w2 = w2_ref[...]
    b2 = b2_ref[...]
    for s in range(nsub):            # static trip count -> fully unrolled
        r0 = s * sub                 # static offset -> zero-cost slice
        xs = x_ref[pl.ds(r0, sub), :]                            # (sub, cin)
        h = jnp.dot(xs, w1, preferred_element_type=jnp.float32)  # MXU
        h = jnp.maximum(h + b1, 0.0)                             # (sub, 6)
        y = jnp.dot(h, w2, preferred_element_type=jnp.float32)   # MXU
        y = jnp.maximum(y + b2, 0.0)                             # (sub, 3)
        # Narrow (3-lane) store: accepted for now, see header TODO.
        o_ref[pl.ds(r0, sub), :] = y.astype(o_ref.dtype)


def model_features_forward(x, w1, b1, w2, b2, *, tile_b=None):
    """x: (B, in_channels) float32.  Weights stored (in, out), so the kernel
    computes x @ W + b (== PyTorch's x @ W.T + b)."""
    B, cin = x.shape
    out_dim = w2.shape[1]

    if tile_b is None:
        if B <= SUB_ROWS:
            tile_b = _round_up(max(B, 1), 8)     # single small tile
        else:
            # ~B/4 rows per tile (>= 4 grid steps for v7x's 2 TCs), rounded up
            # to whole sub-blocks, capped for the v5e/v7x VMEM budget.
            tile_b = min(TILE_B_MAX, _round_up(pl.cdiv(B, 4), SUB_ROWS))
    else:
        tile_b = _round_up(tile_b, 8)

    sub = min(tile_b, SUB_ROWS)
    if tile_b % sub != 0:            # only reachable with a hand-picked tile_b
        sub = tile_b
    nsub = tile_b // sub
    n_tiles = pl.cdiv(B, tile_b)

    kernel = functools.partial(mlp_kernel, sub=sub, nsub=nsub)

    return pl.pallas_call(
        kernel,
        out_shape=jax.ShapeDtypeStruct((B, out_dim), jnp.float32),
        grid_spec=pltpu.PrefetchScalarGridSpec(
            num_scalar_prefetch=0,
            grid=(n_tiles,),
            in_specs=[
                # x: tiled along batch; ragged last block masked by Pallas.
                pl.BlockSpec((tile_b, cin), lambda i: (i, 0)),
                # Weights / biases: constant index_map -> DMA'd once and kept
                # VMEM-resident across the whole grid.
                pl.BlockSpec(w1.shape, lambda i: (0, 0)),
                pl.BlockSpec(b1.shape, lambda i: (0, 0)),
                pl.BlockSpec(w2.shape, lambda i: (0, 0)),
                pl.BlockSpec(b2.shape, lambda i: (0, 0)),
            ],
            out_specs=pl.BlockSpec((tile_b, out_dim), lambda i: (i, 0)),
        ),
        compiler_params=pltpu.CompilerParams(
            # Independent batch tiles -> shardable across v7x's 2 TensorCores.
            dimension_semantics=("parallel",)),
    )(x, w1, b1, w2, b2)


def init_params(key, in_channels, out_l1=6, out_l2=3):
    # Deterministic init mimicking nn.Linear's uniform(-1/sqrt(fan_in), +..).
    k1, k2, k3, k4 = jax.random.split(key, 4)
    bound1 = 1.0 / jnp.sqrt(in_channels)
    bound2 = 1.0 / jnp.sqrt(out_l1)
    # Stored as (in, out) so the kernel does x @ W.
    w1 = jax.random.uniform(k1, (in_channels, out_l1), jnp.float32,
                            -bound1, bound1)
    b1 = jax.random.uniform(k2, (1, out_l1), jnp.float32, -bound1, bound1)
    w2 = jax.random.uniform(k3, (out_l1, out_l2), jnp.float32,
                            -bound2, bound2)
    b2 = jax.random.uniform(k4, (1, out_l2), jnp.float32, -bound2, bound2)
    return w1, b1, w2, b2


def _ref(x, w1, b1, w2, b2):
    hp = jax.lax.Precision.HIGHEST
    h = jnp.maximum(jnp.dot(x, w1, precision=hp) + b1, 0.0)
    return jnp.maximum(jnp.dot(h, w2, precision=hp) + b2, 0.0)


if __name__ == "__main__":
    key = jax.random.PRNGKey(0)
    in_channels = 32

    kx1, kx2, kx3, kp = jax.random.split(key, 4)
    w1, b1, w2, b2 = init_params(kp, in_channels)

    # Small demo batch: single grid step, single sub-block.
    x1 = jax.random.normal(kx1, (8, in_channels), jnp.float32)
    o1 = jax.block_until_ready(model_features_forward(x1, w1, b1, w2, b2))
    assert o1.shape == (8, 3)
    assert jnp.allclose(o1, _ref(x1, w1, b1, w2, b2), atol=2e-5, rtol=2e-5)

    # Multi-tile path with a ragged (masked) last block; no host pad/slice.
    x2 = jax.random.normal(kx2, (1000, in_channels), jnp.float32)
    o2 = jax.block_until_ready(model_features_forward(x2, w1, b1, w2, b2))
    assert o2.shape == (1000, 3)
    assert jnp.allclose(o2, _ref(x2, w1, b1, w2, b2), atol=2e-5, rtol=2e-5)

    # Larger tiles: multiple in-kernel 512-row sub-blocks per grid step.
    x3 = jax.random.normal(kx3, (5000, in_channels), jnp.float32)
    o3 = jax.block_until_ready(model_features_forward(x3, w1, b1, w2, b2))
    assert o3.shape == (5000, 3)
    assert jnp.allclose(o3, _ref(x3, w1, b1, w2, b2), atol=2e-5, rtol=2e-5)

    print("KERNEL_OK")
</pallas_src>

<mosaic_0001>
module attributes {stable_mosaic.version = 11 : i64} {
  func.func @mlp_kernel(%arg0: i32, %arg1: memref<8x32xf32, #tpu.memory_space<vmem>>, %arg2: memref<32x6xf32, #tpu.memory_space<vmem>>, %arg3: memref<1x6xf32, #tpu.memory_space<vmem>>, %arg4: memref<6x3xf32, #tpu.memory_space<vmem>>, %arg5: memref<1x3xf32, #tpu.memory_space<vmem>>, %arg6: memref<8x3xf32, #tpu.memory_space<vmem>>) attributes {dimension_semantics = [#tpu.dimension_semantics<parallel>], iteration_bounds = array<i64: 1>, scalar_prefetch = 0 : i64, scratch_operands = 0 : i64, tpu.core_type = #tpu.core_type<tc>, window_params = [{transform_indices = @transform_0, window_bounds = array<i64: 8, 32>}, {pipeline_mode = #tpu.pipeline_mode<synchronous>, transform_indices = @transform_1, window_bounds = array<i64: 32, 6>}, {pipeline_mode = #tpu.pipeline_mode<synchronous>, transform_indices = @transform_2, window_bounds = array<i64: 1, 6>}, {pipeline_mode = #tpu.pipeline_mode<synchronous>, transform_indices = @transform_3, window_bounds = array<i64: 6, 3>}, {pipeline_mode = #tpu.pipeline_mode<synchronous>, transform_indices = @transform_4, window_bounds = array<i64: 1, 3>}, {transform_indices = @transform_5, window_bounds = array<i64: 8, 3>}]} {
    %c0 = arith.constant 0 : index
    %c0_0 = arith.constant 0 : index
    %0 = vector.load %arg2[%c0, %c0_0] : memref<32x6xf32, #tpu.memory_space<vmem>>, vector<32x6xf32>
    %c0_1 = arith.constant 0 : index
    %c0_2 = arith.constant 0 : index
    %1 = vector.load %arg3[%c0_1, %c0_2] : memref<1x6xf32, #tpu.memory_space<vmem>>, vector<1x6xf32>
    %c0_3 = arith.constant 0 : index
    %c0_4 = arith.constant 0 : index
    %2 = vector.load %arg4[%c0_3, %c0_4] : memref<6x3xf32, #tpu.memory_space<vmem>>, vector<6x3xf32>
    %c0_5 = arith.constant 0 : index
    %c0_6 = arith.constant 0 : index
    %3 = vector.load %arg5[%c0_5, %c0_6] : memref<1x3xf32, #tpu.memory_space<vmem>>, vector<1x3xf32>
    %c0_7 = arith.constant 0 : index
    %c0_8 = arith.constant 0 : index
    %4 = vector.load %arg1[%c0_7, %c0_8] : memref<8x32xf32, #tpu.memory_space<vmem>>, vector<8x32xf32>
    %cst = arith.constant dense<0.000000e+00> : vector<8x6xf32>
    %5 = tpu.matmul %4, %0, %cst {dimension_numbers = #tpu.dot_dimension_numbers<[1], [0], [0], [1], [0, 0, 1, 1], [], []>} : vector<8x32xf32>, vector<32x6xf32>, vector<8x6xf32> -> vector<8x6xf32>
    %6 = vector.broadcast %1 : vector<1x6xf32> to vector<8x6xf32>
    %7 = arith.addf %5, %6 : vector<8x6xf32>
    %cst_9 = arith.constant 0.000000e+00 : f32
    %8 = vector.broadcast %cst_9 : f32 to vector<8x6xf32>
    %9 = arith.maximumf %7, %8 : vector<8x6xf32>
    %cst_10 = arith.constant dense<0.000000e+00> : vector<8x3xf32>
    %10 = tpu.matmul %9, %2, %cst_10 {dimension_numbers = #tpu.dot_dimension_numbers<[1], [0], [0], [1], [0, 0, 1, 1], [], []>} : vector<8x6xf32>, vector<6x3xf32>, vector<8x3xf32> -> vector<8x3xf32>
    %11 = vector.broadcast %3 : vector<1x3xf32> to vector<8x3xf32>
    %12 = arith.addf %10, %11 : vector<8x3xf32>
    %cst_11 = arith.constant 0.000000e+00 : f32
    %13 = vector.broadcast %cst_11 : f32 to vector<8x3xf32>
    %14 = arith.maximumf %12, %13 : vector<8x3xf32>
    %c0_12 = arith.constant 0 : index
    %c0_13 = arith.constant 0 : index
    %15 = vector.load %arg6[%c0_12, %c0_13] : memref<8x3xf32, #tpu.memory_space<vmem>>, vector<8x3xf32>
    tpu.vector_store %arg6[%c0_12, %c0_13], %14 {strides = array<i32>} : memref<8x3xf32, #tpu.memory_space<vmem>>, vector<8x3xf32>,
    return
  }
  func.func @transform_0(%arg0: i32) -> (i32, i32) {
    %c0_i32 = arith.constant 0 : i32
    %c0_i32_0 = arith.constant 0 : i32
    return %arg0, %c0_i32 : i32, i32
  }
  func.func @transform_1(%arg0: i32) -> (i32, i32) {
    %c0_i32 = arith.constant 0 : i32
    %c0_i32_0 = arith.constant 0 : i32
    %c0_i32_1 = arith.constant 0 : i32
    return %c0_i32, %c0_i32_0 : i32, i32
  }
  func.func @transform_2(%arg0: i32) -> (i32, i32) {
    %c0_i32 = arith.constant 0 : i32
    %c0_i32_0 = arith.constant 0 : i32
    %c0_i32_1 = arith.constant 0 : i32
    return %c0_i32, %c0_i32_0 : i32, i32
  }
  func.func @transform_3(%arg0: i32) -> (i32, i32) {
    %c0_i32 = arith.constant 0 : i32
    %c0_i32_0 = arith.constant 0 : i32
    %c0_i32_1 = arith.constant 0 : i32
    return %c0_i32, %c0_i32_0 : i32, i32
  }
  func.func @transform_4(%arg0: i32) -> (i32, i32) {
    %c0_i32 = arith.constant 0 : i32
    %c0_i32_0 = arith.constant 0 : i32
    %c0_i32_1 = arith.constant 0 : i32
    return %c0_i32, %c0_i32_0 : i32, i32
  }
  func.func @transform_5(%arg0: i32) -> (i32, i32) {
    %c0_i32 = arith.constant 0 : i32
    %c0_i32_0 = arith.constant 0 : i32
    return %arg0, %c0_i32 : i32, i32
  }
}

</mosaic_0001>

<bundles_post_ra>
// kernel: tpu_custom_call.1
= control target key start
LH: loop header
LB: loop body
LE: loop exit
PB: predicated region body
PF: predicated region fallthrough
CT: control target
= control target key end

     0   :  { %vm31_vm0 = vcmask 261120   ;;  %vm63_vm1 = vcmask 1045504   ;;  %vm59_vm2 = vcmask 48128   ;;  %vm88_vm3 = vcmask 23552   ;;  %s156_s1 = inlined_call_operand.vmem [shape: f32[32,6], index: 1, kind: input, shape index: {}]   ;;  %s157_s2 = inlined_call_operand.vmem [shape: f32[1,6], index: 2, kind: input, shape index: {}]   ;;  %s158_s0 = inlined_call_operand.vmem [shape: f32[8,32], index: 0, kind: input, shape index: {}]   ;;  %s159_s4 = inlined_call_operand.vmem [shape: f32[1,3], index: 4, kind: input, shape index: {}]   ;;  %s160_s3 = inlined_call_operand.vmem [shape: f32[6,3], index: 3, kind: input, shape index: {}]   ;;  %s161_s5 = inlined_call_operand.vmem [shape: f32[8,3], index: 5, kind: output, shape index: {}]  }
   0x1   :  { %v23_v0 = vld [vmem:[%s156_s1 + $0x18] sm:$0xff]  ;;  %v22_v1 = vld [vmem:[%s156_s1 + $0x10] sm:$0xff]  ;;  %v21_v2 = vld [vmem:[%s156_s1 + $0x8] sm:$0xff] }
   0x2   :  { %47 = vmatpush.msra.mxu0 %v23_v0  ;;  %v20_v3 = vld [vmem:[%s156_s1] sm:$0xff] }
   0x3   :  { %v27_v4 = vld [vmem:[%s158_s0] sm:$0xff] }
   0x4   :  { %48 = vmatpush.msra.mxu0 %v22_v1  ;;  %v25_v5 = vld [vmem:[%s160_s3] sm:$0x3f] }
   0x5   :  { %95 = vmatpush.msk.msra.mxu1 %vm63_vm1, %v25_v5  ;;  %v97_v6 = vld [vmem:[%s157_s2] ss:$0 sm:$0xff] }
   0x6   :  { %49 = vmatpush.msra.mxu0 %v21_v2  ;;  %v98_v10 = vld [vmem:[%s159_s4] ss:$0 sm:$0xff] }
   0x8   :  { %50 = vmatpush.msra.mxu0 %v20_v3 }
   0x9   :  { %94 = vmatmul.msk.f32.vlgmr.msra.gmra.mxu0 %vm31_vm0, %v27_v4 }
  0x86   :  { %v52_v7 = vpop.f32.mrf.mxu0 }
  0x87   :  { %v53_v8 = vadd.f32 %v97_v6, %v52_v7 }
  0x89   :  { %v55_v9 = vmax.f32 %v53_v8, 0.0 }
  0x8b   :  { %96 = vmatmul.msk.f32.vlgmr.msra.gmra.mxu1 %vm59_vm2, %v55_v9 }
 0x108   :  { %v84_v11 = vpop.f32.mrf.mxu1 }
 0x109   :  { %v85_v12 = vadd.f32 %v98_v10, %v84_v11 }
 0x10b   :  { %v87_v13 = vmax.f32 %v85_v12, 0.0 }
 0x10d   :  { %89 = vst.msk [vmem:[%s161_s5] sm:$0xff] %vm88_vm3, %v87_v13 }

</bundles_post_ra>
